<compile_context>
chip_gen: v7x
topology: tpu7x:2x2x1
jax: 0.10.0
libtpu: 0.0.40
codegen_flags: <defaults>
</compile_context>

<pallas_src>
import jax
import jax.numpy as jnp
from jax.experimental import pallas as pl
from jax.experimental.pallas import tpu as pltpu


# --------------------------------------------------------------------------
# Helpers
# --------------------------------------------------------------------------
def _round_up(v, m):
    return (v + m - 1) // m * m


def _pad2(a, rows, cols):
    pr, pc = rows - a.shape[0], cols - a.shape[1]
    if pr == 0 and pc == 0:
        return a
    return jnp.pad(a, ((0, pr), (0, pc)))


def _default_vmem_limit_bytes():
    """~3/4 of physical VMEM: ~96 MiB on v5e/v6e (128 MiB), ~48 MiB on v7x (64 MiB)."""
    try:
        cap = int(pltpu.get_tpu_info().vmem_capacity_bytes)
    except Exception:
        cap = 64 * 1024 * 1024          # conservative (v7x-sized) fallback
    return int(min(100 * 1024 * 1024, cap * 3 // 4))


def _choose_tiles(n, block_m, block_k):
    """Clamp tiles to the problem size (no lcm blowup) while keeping divisibility."""
    assert block_m % 8 == 0 and block_k % 128 == 0
    assert block_k % block_m == 0, "block_k must be a multiple of block_m"
    if n <= block_m:
        n_p = max(_round_up(n, 128), 128)
        bm = bk = n_p
    elif n <= block_k:
        bm = block_m
        n_p = _round_up(n, bm)
        bk = n_p
    else:
        bm, bk = block_m, block_k
        n_p = _round_up(n, bk)
    # v7x has 2 TensorCores: keep >= 2 row tiles on the "parallel" axis when possible.
    if n_p // bm == 1 and n_p >= 256:
        bm = n_p // 2                   # n_p is a multiple of 128 -> bm % 8 == 0
    return bm, bk, n_p


# --------------------------------------------------------------------------
# Kernels
# --------------------------------------------------------------------------
def _make_kernel(fuse_weight, feat_resident, bk):
    """Build the kernel body.

    fuse_weight:   Cin <= Cout -> accumulate A @ (d*X), apply row scale + @W in finalize.
                   else         -> H = (d*X)@W precomputed; accumulate A @ H, row-scale.
    feat_resident: feature slab lives whole in VMEM (constant block index, sliced by k)
                   vs. streamed per k tile.
    """

    def load_feat(feat_ref, k):
        if feat_resident:
            start = pl.multiple_of(k * bk, 128)
            return feat_ref[pl.ds(start, bk), :]
        return feat_ref[...]

    if fuse_weight:
        def kernel(dsqrt_ref, adj_ref, feat_ref, w_ref, out_ref, acc_ref):
            k = pl.program_id(1)

            @pl.when(k == 0)
            def _():
                acc_ref[...] = jnp.zeros_like(acc_ref)

            # int8 adjacency tile -> matmul dtype on the VPU (free in mem-bound regime).
            a = adj_ref[...].astype(feat_ref.dtype)
            acc_ref[...] += jnp.dot(a, load_feat(feat_ref, k),
                                    preferred_element_type=jnp.float32)

            @pl.when(k == pl.num_programs(1) - 1)
            def _():
                # Scale the narrower (cin_p-lane) accumulator, then one MXU matmul
                # in the matmul dtype with f32 accumulation.
                scaled = (dsqrt_ref[...] * acc_ref[...]).astype(w_ref.dtype)
                out_ref[...] = jnp.dot(
                    scaled, w_ref[...],
                    preferred_element_type=jnp.float32).astype(out_ref.dtype)
        return kernel

    def kernel(dsqrt_ref, adj_ref, feat_ref, out_ref, acc_ref):
        k = pl.program_id(1)

        @pl.when(k == 0)
        def _():
            acc_ref[...] = jnp.zeros_like(acc_ref)

        a = adj_ref[...].astype(feat_ref.dtype)
        acc_ref[...] += jnp.dot(a, load_feat(feat_ref, k),
                                preferred_element_type=jnp.float32)

        @pl.when(k == pl.num_programs(1) - 1)
        def _():
            out_ref[...] = (dsqrt_ref[...] * acc_ref[...]).astype(out_ref.dtype)
    return kernel


# --------------------------------------------------------------------------
# Wrapper
# --------------------------------------------------------------------------
def gcn_conv_pallas(adj, x, weight, *,
                    block_m=512, block_k=2048,
                    matmul_dtype=jnp.bfloat16,
                    feat_resident=None,
                    vmem_limit_bytes=None):
    """adj: (N, N) adjacency incl. self loops (0/1, 2 on doubled diag; any int/float
    dtype - build it in int8 to avoid an extra N^2 cast pass), x: (N, Cin),
    weight: (Cin, Cout). `matmul_dtype` is an accuracy knob: bf16 halves feature/W
    traffic but rounds d^{-1/2}*X; use f32 for bit-tight results.
    """
    n = adj.shape[0]
    cin, cout = weight.shape
    out_dtype = x.dtype

    if vmem_limit_bytes is None:
        vmem_limit_bytes = _default_vmem_limit_bytes()

    # ---- cheap glue: normalization folded into vectors -----------------------
    #   D^{-1/2} A D^{-1/2} X W  ==  d .* (A (d .* X)) W     with d = deg^{-1/2}
    adj_i8 = adj.astype(jnp.int8)                               # no-op if already int8
    deg = jnp.sum(adj_i8, axis=1, dtype=jnp.float32)            # 1 B/elem row-sum
    # self loops guarantee deg >= 1; the clamp only protects degenerate rows.
    d_inv_sqrt = jax.lax.rsqrt(jnp.maximum(deg, 1e-12))
    xs = x.astype(jnp.float32) * d_inv_sqrt[:, None]            # (N, Cin)

    fuse_weight = cin <= cout
    if fuse_weight:
        feat, f_dim = xs, cin                                   # contract adj vs X
    else:
        feat = jnp.dot(xs, weight.astype(jnp.float32))          # tiny O(N*Cin*Cout)
        f_dim = cout

    # ---- tiling / padding to lane/sublane-friendly shapes ---------------------
    bm, bk, n_p = _choose_tiles(n, block_m, block_k)
    f_p = _round_up(f_dim, 128)
    cin_p = _round_up(cin, 128)
    cout_p = _round_up(cout, 128)

    feat_buf_bytes = 2 * n_p * f_p * jnp.dtype(matmul_dtype).itemsize
    if feat_resident is None:
        feat_resident = feat_buf_bytes <= min(8 * 1024 * 1024, vmem_limit_bytes // 4)

    adj_p = _pad2(adj_i8, n_p, n_p)                             # int8 in HBM
    feat_p = _pad2(feat, n_p, f_p).astype(matmul_dtype)
    dsqrt_p = _pad2(d_inv_sqrt[:, None], n_p, 1)                # (N_p, 1) f32

    grid = (n_p // bm, n_p // bk)

    if feat_resident:
        feat_spec = pl.BlockSpec((n_p, f_p), lambda i, k: (0, 0))   # DMA'd once
    else:
        feat_spec = pl.BlockSpec((bk, f_p), lambda i, k: (k, 0))    # streamed per k

    in_specs = [
        pl.BlockSpec((bm, 1), lambda i, k: (i, 0)),                 # d^{-1/2} rows
        pl.BlockSpec((bm, bk), lambda i, k: (i, k)),                # int8 adj tile
        feat_spec,
    ]
    out_spec = pl.BlockSpec((bm, cout_p), lambda i, k: (i, 0))
    scratch = [pltpu.VMEM((bm, f_p), jnp.float32)]
    cparams = pltpu.CompilerParams(
        dimension_semantics=("parallel", "arbitrary"),
        vmem_limit_bytes=int(vmem_limit_bytes))

    kernel = _make_kernel(fuse_weight, feat_resident, bk)

    if fuse_weight:
        # W stays in the matmul dtype (bf16 by default) -> half the resident footprint.
        w_p = _pad2(weight, cin_p, cout_p).astype(matmul_dtype)
        in_specs.append(pl.BlockSpec((cin_p, cout_p), lambda i, k: (0, 0)))
        args = (dsqrt_p, adj_p, feat_p, w_p)
    else:
        args = (dsqrt_p, adj_p, feat_p)

    out_p = pl.pallas_call(
        kernel,
        out_shape=jax.ShapeDtypeStruct((n_p, cout_p), out_dtype),
        grid=grid,
        in_specs=in_specs,
        out_specs=out_spec,
        scratch_shapes=scratch,
        compiler_params=cparams,
    )(*args)

    return out_p[:n, :cout]


# --------------------------------------------------------------------------
# Glue: adjacency construction (data-dependent scatter, plain JAX) + init
# --------------------------------------------------------------------------
def build_adjacency(edge_index, num_nodes, self_loops=1, dtype=jnp.int8):
    """Mirror GCNConv.normalize_adjacency's adjacency build (before normalization).

    Built directly in int8 so the kernel streams 1 B/element and no extra N^2
    cast pass is ever needed.
    """
    adj = jnp.zeros((num_nodes, num_nodes), dtype=dtype)
    src, dst = edge_index[0], edge_index[1]
    adj = adj.at[src, dst].set(1)
    adj = adj.at[dst, src].set(1)
    eye = jnp.eye(num_nodes, dtype=dtype)
    for _ in range(self_loops):
        adj = adj + eye          # matches PyTorch: diagonal becomes 2 if loop existed
    return adj


def xavier_uniform(key, fan_in, fan_out, dtype=jnp.float32):
    bound = jnp.sqrt(6.0 / (fan_in + fan_out))
    return jax.random.uniform(key, (fan_in, fan_out), dtype=dtype,
                              minval=-bound, maxval=bound)


# TODO(synk): for genuinely sparse graphs, replace the dense N^2 adjacency stream with a
# PrefetchScalarGridSpec blocked-CSR gather that skips empty column tiles entirely.

if __name__ == "__main__":
    key = jax.random.PRNGKey(0)
    k_w, k_x, k_w2 = jax.random.split(key, 3)

    num_nodes = 16
    in_channels = 8
    out_channels = 32

    weight = xavier_uniform(k_w, in_channels, out_channels)

    # Small deterministic graph: ring over 16 nodes plus a few chords.
    src = jnp.array(list(range(num_nodes)) + [0, 2, 5, 7], dtype=jnp.int32)
    dst = jnp.array([(i + 1) % num_nodes for i in range(num_nodes)] + [8, 10, 13, 15],
                    dtype=jnp.int32)
    edge_index = jnp.stack([src, dst], axis=0)

    x = jax.random.normal(k_x, (num_nodes, in_channels), dtype=jnp.float32)

    adj_i8 = build_adjacency(edge_index, num_nodes, self_loops=1)

    # Pure-JAX reference (same math as the PyTorch forward).
    adj_f32 = adj_i8.astype(jnp.float32)
    deg = jnp.sum(adj_f32, axis=1)
    dis = 1.0 / jnp.sqrt(deg)
    adj_norm = adj_f32 * dis[:, None] * dis[None, :]
    ref = (adj_norm @ x) @ weight

    # 1) f32 MXU path, resident-feature BlockSpec (Cin < Cout -> fused-W kernel).
    out_f32 = jax.block_until_ready(
        gcn_conv_pallas(adj_i8, x, weight, matmul_dtype=jnp.float32))
    assert out_f32.shape == (num_nodes, out_channels)
    assert jnp.allclose(out_f32, ref, atol=1e-4, rtol=1e-4)

    # 2) Same math, forcing the streamed (tiled) feature path to exercise it too.
    out_f32_t = jax.block_until_ready(
        gcn_conv_pallas(adj_i8, x, weight, matmul_dtype=jnp.float32,
                        feat_resident=False))
    assert jnp.allclose(out_f32_t, ref, atol=1e-4, rtol=1e-4)

    # 3) bf16 feature/W path with in-kernel int8->bf16 adjacency cast: loose check
    #    (bf16 rounding of d^{-1/2}*X and W is the stated accuracy knob).
    out_bf16 = jax.block_until_ready(
        gcn_conv_pallas(adj_i8, x, weight, matmul_dtype=jnp.bfloat16))
    assert jnp.allclose(out_bf16, ref, atol=1e-1, rtol=5e-2)

    # 4) Second-layer shape (Cout < Cin) exercises the XW-first (pre-W) dispatch path.
    weight2 = xavier_uniform(k_w2, out_channels, in_channels)
    ref2 = (adj_norm @ ref) @ weight2
    out2 = jax.block_until_ready(
        gcn_conv_pallas(adj_i8, ref, weight2, matmul_dtype=jnp.float32))
    assert out2.shape == (num_nodes, in_channels)
    assert jnp.allclose(out2, ref2, atol=1e-4, rtol=1e-4)

    print("KERNEL_OK")
</pallas_src>

<mosaic_0001>
module attributes {stable_mosaic.version = 11 : i64} {
  func.func @kernel(%arg0: i32, %arg1: i32, %arg2: memref<128x1xf32, #tpu.memory_space<vmem>>, %arg3: memref<128x128xi8, #tpu.memory_space<vmem>>, %arg4: memref<128x128xf32, #tpu.memory_space<vmem>>, %arg5: memref<128x128xf32, #tpu.memory_space<vmem>>, %arg6: memref<128x128xf32, #tpu.memory_space<vmem>>, %arg7: memref<128x128xf32, #tpu.memory_space<vmem>>) attributes {dimension_semantics = [#tpu.dimension_semantics<parallel>, #tpu.dimension_semantics<arbitrary>], iteration_bounds = array<i64: 1, 1>, scalar_prefetch = 0 : i64, scratch_operands = 1 : i64, tpu.core_type = #tpu.core_type<tc>, window_params = [{transform_indices = @transform_0, window_bounds = array<i64: 128, 1>}, {transform_indices = @transform_1, window_bounds = array<i64: 128, 128>}, {pipeline_mode = #tpu.pipeline_mode<synchronous>, transform_indices = @transform_2, window_bounds = array<i64: 128, 128>}, {pipeline_mode = #tpu.pipeline_mode<synchronous>, transform_indices = @transform_3, window_bounds = array<i64: 128, 128>}, {transform_indices = @transform_4, window_bounds = array<i64: 128, 128>}]} {
    %c0_i32 = arith.constant 0 : i32
    %0 = arith.cmpi eq, %arg1, %c0_i32 : i32
    %1 = arith.extui %0 : i1 to i32
    %c0_i32_0 = arith.constant 0 : i32
    %2 = arith.cmpi ne, %1, %c0_i32_0 : i32
    scf.if %2 {
      %cst_9 = arith.constant 0.000000e+00 : f32
      %16 = vector.broadcast %cst_9 : f32 to vector<128x128xf32>
      %c0_10 = arith.constant 0 : index
      %c0_11 = arith.constant 0 : index
      %17 = vector.load %arg7[%c0_10, %c0_11] : memref<128x128xf32, #tpu.memory_space<vmem>>, vector<128x128xf32>
      tpu.vector_store %arg7[%c0_10, %c0_11], %16 {strides = array<i32>} : memref<128x128xf32, #tpu.memory_space<vmem>>, vector<128x128xf32>,
    } else {
    }
    %c0 = arith.constant 0 : index
    %c0_1 = arith.constant 0 : index
    %3 = vector.load %arg3[%c0, %c0_1] : memref<128x128xi8, #tpu.memory_space<vmem>>, vector<128x128xi8>
    %4 = arith.sitofp %3 : vector<128x128xi8> to vector<128x128xf32>
    %c0_2 = arith.constant 0 : index
    %c0_3 = arith.constant 0 : index
    %5 = vector.load %arg7[%c0_2, %c0_3] : memref<128x128xf32, #tpu.memory_space<vmem>>, vector<128x128xf32>
    %c128_i32 = arith.constant 128 : i32
    %6 = arith.muli %arg1, %c128_i32 : i32
    %7 = tpu.assume_multiple %6, 128 : i32
    %8 = arith.index_cast %7 : i32 to index
    %c0_4 = arith.constant 0 : index
    %9 = vector.load %arg4[%8, %c0_4] : memref<128x128xf32, #tpu.memory_space<vmem>>, vector<128x128xf32>
    %cst = arith.constant dense<0.000000e+00> : vector<128x128xf32>
    %10 = tpu.matmul %4, %9, %cst {dimension_numbers = #tpu.dot_dimension_numbers<[1], [0], [0], [1], [0, 0, 1, 1], [], []>} : vector<128x128xf32>, vector<128x128xf32>, vector<128x128xf32> -> vector<128x128xf32>
    %11 = arith.addf %5, %10 : vector<128x128xf32>
    %c0_5 = arith.constant 0 : index
    %c0_6 = arith.constant 0 : index
    %12 = vector.load %arg7[%c0_5, %c0_6] : memref<128x128xf32, #tpu.memory_space<vmem>>, vector<128x128xf32>
    tpu.vector_store %arg7[%c0_5, %c0_6], %11 {strides = array<i32>} : memref<128x128xf32, #tpu.memory_space<vmem>>, vector<128x128xf32>,
    %c0_i32_7 = arith.constant 0 : i32
    %13 = arith.cmpi eq, %arg1, %c0_i32_7 : i32
    %14 = arith.extui %13 : i1 to i32
    %c0_i32_8 = arith.constant 0 : i32
    %15 = arith.cmpi ne, %14, %c0_i32_8 : i32
    scf.if %15 {
      %c0_9 = arith.constant 0 : index
      %c0_10 = arith.constant 0 : index
      %16 = vector.load %arg2[%c0_9, %c0_10] : memref<128x1xf32, #tpu.memory_space<vmem>>, vector<128x1xf32>
      %c0_11 = arith.constant 0 : index
      %c0_12 = arith.constant 0 : index
      %17 = vector.load %arg7[%c0_11, %c0_12] : memref<128x128xf32, #tpu.memory_space<vmem>>, vector<128x128xf32>
      %18 = vector.broadcast %16 : vector<128x1xf32> to vector<128x128xf32>
      %19 = arith.mulf %18, %17 : vector<128x128xf32>
      %c0_13 = arith.constant 0 : index
      %c0_14 = arith.constant 0 : index
      %20 = vector.load %arg5[%c0_13, %c0_14] : memref<128x128xf32, #tpu.memory_space<vmem>>, vector<128x128xf32>
      %cst_15 = arith.constant dense<0.000000e+00> : vector<128x128xf32>
      %21 = tpu.matmul %19, %20, %cst_15 {dimension_numbers = #tpu.dot_dimension_numbers<[1], [0], [0], [1], [0, 0, 1, 1], [], []>} : vector<128x128xf32>, vector<128x128xf32>, vector<128x128xf32> -> vector<128x128xf32>
      %c0_16 = arith.constant 0 : index
      %c0_17 = arith.constant 0 : index
      %22 = vector.load %arg6[%c0_16, %c0_17] : memref<128x128xf32, #tpu.memory_space<vmem>>, vector<128x128xf32>
      tpu.vector_store %arg6[%c0_16, %c0_17], %21 {strides = array<i32>} : memref<128x128xf32, #tpu.memory_space<vmem>>, vector<128x128xf32>,
    } else {
    }
    return
  }
  func.func @transform_0(%arg0: i32, %arg1: i32) -> (i32, i32) {
    %c0_i32 = arith.constant 0 : i32
    %c0_i32_0 = arith.constant 0 : i32
    return %arg0, %c0_i32 : i32, i32
  }
  func.func @transform_1(%arg0: i32, %arg1: i32) -> (i32, i32) {
    %c0_i32 = arith.constant 0 : i32
    return %arg0, %arg1 : i32, i32
  }
  func.func @transform_2(%arg0: i32, %arg1: i32) -> (i32, i32) {
    %c0_i32 = arith.constant 0 : i32
    %c0_i32_0 = arith.constant 0 : i32
    %c0_i32_1 = arith.constant 0 : i32
    return %c0_i32, %c0_i32_0 : i32, i32
  }
  func.func @transform_3(%arg0: i32, %arg1: i32) -> (i32, i32) {
    %c0_i32 = arith.constant 0 : i32
    %c0_i32_0 = arith.constant 0 : i32
    %c0_i32_1 = arith.constant 0 : i32
    return %c0_i32, %c0_i32_0 : i32, i32
  }
  func.func @transform_4(%arg0: i32, %arg1: i32) -> (i32, i32) {
    %c0_i32 = arith.constant 0 : i32
    %c0_i32_0 = arith.constant 0 : i32
    return %arg0, %c0_i32 : i32, i32
  }
}

</mosaic_0001>

<bundles_post_ra>
// kernel: tpu_custom_call.1
= control target key start
LH: loop header
LB: loop body
LE: loop exit
PB: predicated region body
PF: predicated region fallthrough
CT: control target
= control target key end

     0   :  { %9 = vsyncpa [#allocation4], 0  ;;  %s1137_s0 = inlined_call_operand.vmem [shape: f32[128,1], index: 0, kind: input, shape index: {}]   ;;  %s1138_s1 = inlined_call_operand.hbm [shape: s8[128,128], index: 1, kind: input, shape index: {}]   ;;  %s1139_s2 = inlined_call_operand.vmem [shape: f32[128,128], index: 2, kind: input, shape index: {}]   ;;  %s1140_s3 = inlined_call_operand.hbm [shape: f32[128,128], index: 3, kind: input, shape index: {}]   ;;  %s1141_s4 = inlined_call_operand.hbm [shape: f32[128,128], index: 4, kind: output, shape index: {}]  }
   0x1   :  { %10 = vsyncpa [#allocation7], 0 }
   0x2   :  { %11 = vsyncpa [#allocation5], 0  ;;  %s959_s15 = smov [#allocation3]   ;;  %s887_s19 = scalar_lea.hbm %s1138_s1, 512 }
   0x3   :  { %s19_s16 = sshll.u32 %s959_s15, 4  ;;  %p888_p0 = scmp.ne.s32.totalorder %s1138_s1, %s887_s19  ;;  %s20_s16 = int_to_ptr.vmem [resolvable:$true] %s19_s16 }
   0x4   :  { %p891_p1 = scmp.lt.u32.totalorder %s887_s19, %s1138_s1 }
   0x6   :  { %p893_p2 = pnand %p891_p1, %p888_p0 }
   0x8   :  { %896 = shalt.err (!%p893_p2)
}
   0x9   :  { %s897_s24 = scalar_lea.vmem %s20_s16, 512  ;;  %p902_p4 = scmp.lt.s32.totalorder %s20_s16, %s20_s16 }
   0xa   :  { %p898_p3 = scmp.ne.s32.totalorder %s20_s16, %s897_s24  ;;  %p903_p5 = scmp.lt.s32.totalorder %s897_s24, %s897_s24 }
   0xc   :  { %p904_p6 = por %p903_p5, %p902_p4 }
   0xe   :  { %p905_p7 = pnand %p904_p6, %p898_p3 }
  0x10   :  { %908 = shalt.err (!%p905_p7)
}
  0x11   :  { %s960_s25 = smov 128   ;;  %s961_s26 = smov 8  }
  0x12   :  { %25 = dma.hbm_to_vmem [thread:$0]  %s1138_s1, 512, %s20_s16, [#allocation4], %s960_s25, %s960_s25, %s961_s26  }
  0x13   :  { %s962_s29 = smov [#allocation6]   ;;  %s909_s7 = scalar_lea.hbm %s1140_s3, 2048 }
  0x14   :  { %s33_s30 = sshll.u32 %s962_s29, 4  ;;  %p910_p8 = scmp.ne.s32.totalorder %s1140_s3, %s909_s7  ;;  %s34_s30 = int_to_ptr.vmem [resolvable:$true] %s33_s30 }
  0x15   :  { %p913_p9 = scmp.lt.u32.totalorder %s909_s7, %s1140_s3 }
  0x17   :  { %p915_p10 = pnand %p913_p9, %p910_p8 }
  0x19   :  { %918 = shalt.err (!%p915_p10)
}
  0x1a   :  { %s919_s12 = scalar_lea.vmem %s34_s30, 2048  ;;  %p924_p12 = scmp.lt.s32.totalorder %s34_s30, %s34_s30 }
  0x1b   :  { %p920_p11 = scmp.ne.s32.totalorder %s34_s30, %s919_s12  ;;  %p925_p13 = scmp.lt.s32.totalorder %s919_s12, %s919_s12 }
  0x1d   :  { %p926_p0 = por %p925_p13, %p924_p12 }
  0x1f   :  { %p927_p1 = pnand %p926_p0, %p920_p11 }
  0x21   :  { %930 = shalt.err (!%p927_p1)
}
  0x22   :  { %39 = dma.hbm_to_vmem [thread:$0]  %s1140_s3, 2048, %s34_s30, [#allocation7], %s960_s25, %s960_s25, %s961_s26  }
  0x23   :  { %953 = dma.done.wait [#allocation4], 512  }
  0x24   :  { %954 = vsyncadd [#allocation4], 4294966784 }
  0x25   :  { %955 = dma.done.wait [#allocation7], 2048  }
  0x26   :  { %956 = vsyncadd [#allocation7], 4294965248  ;;  %v963_v0 = vmov 0   ;;  %v120_v1 = vld [vmem:[%s1139_s2] sm:$0xff]  ;;  %v121_v2 = vld [vmem:[%s1139_s2 + $0x8] sm:$0xff] }
  0x27   :  { %885 = vset.pattern.permute.xlu0 %v963_v0  ;;  %886 = vset.pattern.permute.xlu1 %v963_v0  ;;  %v122_v3 = vld [vmem:[%s1139_s2 + $0x10] sm:$0xff]  ;;  %v815_v4 = vpack.c.bf16 %v121_v2, %v120_v1  ;;  %v123_v5 = vld [vmem:[%s1139_s2 + $0x18] sm:$0xff]  ;;  %v124_v7 = vld [vmem:[%s1139_s2 + $0x20] sm:$0xff] }
  0x28   :  { %v819_v6 = vpack.c.bf16 %v123_v5, %v122_v3  ;;  %v125_v8 = vld [vmem:[%s1139_s2 + $0x28] sm:$0xff]  ;;  %v1038_v10 = vld [vmem:[#allocation3] sm:$0xff]  ;;  %v126_v11 = vld [vmem:[%s1139_s2 + $0x30] sm:$0xff] }
  0x29   :  { %816 = vmatprep.subr.bf16.mxu0 %v815_v4  ;;  %v823_v9 = vpack.c.bf16 %v125_v8, %v124_v7  ;;  %v127_v12 = vld [vmem:[%s1139_s2 + $0x38] sm:$0xff]  ;;  %v70_v13 = vunpack.c.0.s8 %v1038_v10  ;;  %v316_v14 = vld [vmem:[%s1137_s0] sm:$0xff]  ;;  %v318_v15 = vld [vmem:[%s1137_s0 + $0x10] sm:$0xff]  ;;  %v71_v54 = vunpack.c.1.s8 %v1038_v10  ;;  %v72_v56 = vunpack.c.2.s8 %v1038_v10 }
  0x2a   :  { %818 = vmatpush3.bf16.msra.mxu0 %v815_v4  ;;  %350 = vperm.xlu0 %885, %v316_v14   ;;  %v317_v17 = vld [vmem:[%s1137_s0 + $0x8] sm:$0xff]  ;;  %v827_v18 = vpack.c.bf16 %v127_v12, %v126_v11  ;;  %v319_v19 = vld [vmem:[%s1137_s0 + $0x18] sm:$0xff]  ;;  %v128_v20 = vld [vmem:[%s1139_s2 + $0x40] sm:$0xff]  ;;  %v73_v63 = vunpack.c.3.s8 %v1038_v10 }
  0x2b   :  { %820 = vmatprep.subr.bf16.mxu0 %v819_v6  ;;  %v86_v16 = vcvt.s32.f32 %v70_v13  ;;  %360 = vperm.xlu1 %886, %v318_v15   ;;  %v129_v21 = vld [vmem:[%s1139_s2 + $0x48] sm:$0xff]  ;;  %v320_v22 = vld [vmem:[%s1137_s0 + $0x20] sm:$0xff]  ;;  %v446_v25 = vld [vmem:[#allocation6 + $0x10] sm:$0xff]  ;;  %v87_v62 = vcvt.s32.f32 %v71_v54  ;;  %v88_v0 = vcvt.s32.f32 %v72_v56 }
  0x2c   :  { %v444_v23 = vld [vmem:[#allocation6] sm:$0xff]  ;;  %v445_v24 = vld [vmem:[#allocation6 + $0x8] sm:$0xff]  ;;  %v831_v26 = vpack.c.bf16 %v129_v21, %v128_v20  ;;  %v447_v28 = vld [vmem:[#allocation6 + $0x18] sm:$0xff]  ;;  %v89_v7 = vcvt.s32.f32 %v73_v63 }
  0x2d   :  { %735 = vmatprep.mubr.f32.mxu0 %v86_v16  ;;  %v321_v27 = vld [vmem:[%s1137_s0 + $0x28] sm:$0xff]  ;;  %v130_v29 = vld [vmem:[%s1139_s2 + $0x50] sm:$0xff]  ;;  %v131_v30 = vld [vmem:[%s1139_s2 + $0x58] sm:$0xff]  ;;  %v847_v31 = vpack.c.bf16 %v445_v24, %v444_v23  ;;  %v851_v32 = vpack.c.bf16 %v447_v28, %v446_v25 }
  0x2e   :  { %822 = vmatpush3.bf16.msra.mxu0 %v819_v6  ;;  %355 = vperm.xlu0 %885, %v317_v17   ;;  %v322_v33 = vld [vmem:[%s1137_s0 + $0x30] sm:$0xff]  ;;  %v448_v34 = vld [vmem:[#allocation6 + $0x20] sm:$0xff]  ;;  %v449_v35 = vld [vmem:[#allocation6 + $0x28] sm:$0xff]  ;;  %v835_v36 = vpack.c.bf16 %v131_v30, %v130_v29 }
  0x2f   :  { %824 = vmatprep.subr.bf16.mxu0 %v823_v9  ;;  %365 = vperm.xlu1 %886, %v319_v19   ;;  %v323_v37 = vld [vmem:[%s1137_s0 + $0x38] sm:$0xff]  ;;  %v132_v38 = vld [vmem:[%s1139_s2 + $0x60] sm:$0xff]  ;;  %v133_v39 = vld [vmem:[%s1139_s2 + $0x68] sm:$0xff]  ;;  %v855_v40 = vpack.c.bf16 %v449_v35, %v448_v34 }
  0x30   :  { %848 = vmatprep.subr.bf16.mxu1 %v847_v31  ;;  %v324_v41 = vld [vmem:[%s1137_s0 + $0x40] sm:$0xff]  ;;  %v450_v42 = vld [vmem:[#allocation6 + $0x30] sm:$0xff]  ;;  %v451_v43 = vld [vmem:[#allocation6 + $0x38] sm:$0xff]  ;;  %v839_v44 = vpack.c.bf16 %v133_v39, %v132_v38 }
  0x31   :  { %850 = vmatpush3.bf16.msra.mxu1 %v847_v31  ;;  %v325_v45 = vld [vmem:[%s1137_s0 + $0x48] sm:$0xff]  ;;  %v134_v46 = vld [vmem:[%s1139_s2 + $0x70] sm:$0xff]  ;;  %v135_v47 = vld [vmem:[%s1139_s2 + $0x78] sm:$0xff]  ;;  %v859_v48 = vpack.c.bf16 %v451_v43, %v450_v42 }
  0x32   :  { %826 = vmatpush3.bf16.msra.mxu0 %v823_v9  ;;  %370 = vperm.xlu0 %885, %v320_v22   ;;  %v326_v49 = vld [vmem:[%s1137_s0 + $0x50] sm:$0xff]  ;;  %v452_v50 = vld [vmem:[#allocation6 + $0x40] sm:$0xff]  ;;  %v453_v51 = vld [vmem:[#allocation6 + $0x48] sm:$0xff]  ;;  %v843_v52 = vpack.c.bf16 %v135_v47, %v134_v46 }
  0x33   :  { %828 = vmatprep.subr.bf16.mxu0 %v827_v18  ;;  %375 = vperm.xlu1 %886, %v321_v27   ;;  %v327_v53 = vld [vmem:[%s1137_s0 + $0x58] sm:$0xff]  ;;  %v863_v55 = vpack.c.bf16 %v453_v51, %v452_v50  ;;  %v328_v57 = vld [vmem:[%s1137_s0 + $0x60] sm:$0xff]  ;;  %v67_v58 = vld [vmem:[#allocation3 + $0x8] sm:$0xff] }
  0x34   :  { %852 = vmatprep.subr.bf16.mxu1 %v851_v32  ;;  %v329_v59 = vld [vmem:[%s1137_s0 + $0x68] sm:$0xff]  ;;  %v454_v60 = vld [vmem:[#allocation6 + $0x50] sm:$0xff]  ;;  %v455_v61 = vld [vmem:[#allocation6 + $0x58] sm:$0xff]  ;;  %v74_v1 = vunpack.c.0.s8 %v67_v58  ;;  %v75_v8 = vunpack.c.1.s8 %v67_v58  ;;  %v76_v11 = vunpack.c.2.s8 %v67_v58  ;;  %v77_v14 = vunpack.c.3.s8 %v67_v58 }
  0x35   :  { %854 = vmatpush3.bf16.msra.mxu1 %v851_v32  ;;  %v330_v2 = vld [vmem:[%s1137_s0 + $0x70] sm:$0xff]  ;;  %v456_v3 = vld [vmem:[#allocation6 + $0x60] sm:$0xff]  ;;  %v457_v4 = vld [vmem:[#allocation6 + $0x68] sm:$0xff]  ;;  %v867_v6 = vpack.c.bf16 %v455_v61, %v454_v60 }
  0x36   :  { %830 = vmatpush3.bf16.msra.mxu0 %v827_v18  ;;  %380 = vperm.xlu0 %885, %v322_v33   ;;  %v331_v5 = vld [vmem:[%s1137_s0 + $0x78] sm:$0xff]  ;;  %v871_v9 = vpack.c.bf16 %v457_v4, %v456_v3  ;;  %v90_v10 = vcvt.s32.f32 %v74_v1  ;;  %v68_v12 = vld [vmem:[#allocation3 + $0x10] sm:$0xff]  ;;  %v91_v13 = vcvt.s32.f32 %v75_v8  ;;  %v92_v15 = vcvt.s32.f32 %v76_v11  ;;  %s964_s0 = smov [#allocation8]  }
  0x37   :  { %832 = vmatprep.subr.bf16.mxu0 %v831_v26  ;;  %385 = vperm.xlu1 %886, %v323_v37   ;;  %v78_v16 = vunpack.c.0.s8 %v68_v12  ;;  %v93_v17 = vcvt.s32.f32 %v77_v14  ;;  %v79_v18 = vunpack.c.1.s8 %v68_v12  ;;  %v80_v20 = vunpack.c.2.s8 %v68_v12  ;;  %v69_v21 = vld [vmem:[#allocation3 + $0x18] sm:$0xff]  ;;  %v458_v34 = vld [vmem:[#allocation6 + $0x70] sm:$0xff]  ;;  %s626_s24 = sshll.u32 %s964_s0, 4  ;;  %s627_s24 = int_to_ptr.vmem [resolvable:$true] %s626_s24 }
  0x38   :  { %856 = vmatprep.subr.bf16.mxu1 %v855_v40  ;;  %v81_v23 = vunpack.c.3.s8 %v68_v12  ;;  %v82_v25 = vunpack.c.0.s8 %v69_v21  ;;  %v83_v27 = vunpack.c.1.s8 %v69_v21  ;;  %v84_v29 = vunpack.c.2.s8 %v69_v21  ;;  %v459_v35 = vld [vmem:[#allocation6 + $0x78] sm:$0xff]  ;;  %s931_s27 = scalar_lea.vmem %s627_s24, 2048  ;;  %p936_p3 = scmp.lt.s32.totalorder %s627_s24, %s627_s24 }
  0x39   :  { %858 = vmatpush3.bf16.msra.mxu1 %v855_v40  ;;  %v94_v19 = vcvt.s32.f32 %v78_v16  ;;  %v95_v22 = vcvt.s32.f32 %v79_v18  ;;  %v96_v24 = vcvt.s32.f32 %v80_v20  ;;  %v85_v31 = vunpack.c.3.s8 %v69_v21  ;;  %p932_p2 = scmp.ne.s32.totalorder %s627_s24, %s931_s27  ;;  %p937_p4 = scmp.lt.s32.totalorder %s931_s27, %s931_s27 }
  0x3a   :  { %834 = vmatpush3.bf16.msra.mxu0 %v831_v26  ;;  %390 = vperm.xlu0 %885, %v324_v41   ;;  %v97_v26 = vcvt.s32.f32 %v81_v23  ;;  %v98_v28 = vcvt.s32.f32 %v82_v25  ;;  %v99_v30 = vcvt.s32.f32 %v83_v27  ;;  %v100_v32 = vcvt.s32.f32 %v84_v29 }
  0x3b   :  { %836 = vmatprep.subr.bf16.mxu0 %v835_v36  ;;  %395 = vperm.xlu1 %886, %v325_v45   ;;  %v101_v33 = vcvt.s32.f32 %v85_v31  ;;  %p938_p5 = por %p937_p4, %p936_p3 }
  0x3c   :  { %860 = vmatprep.subr.bf16.mxu1 %v859_v48 }
  0x3d   :  { %862 = vmatpush3.bf16.msra.mxu1 %v859_v48  ;;  %p939_p6 = pnand %p938_p5, %p932_p2 }
  0x3e   :  { %838 = vmatpush3.bf16.msra.mxu0 %v835_v36  ;;  %400 = vperm.xlu0 %885, %v326_v49   ;;  %v875_v36 = vpack.c.bf16 %v459_v35, %v458_v34 }
  0x3f   :  { %840 = vmatprep.subr.bf16.mxu0 %v839_v44  ;;  %405 = vperm.xlu1 %886, %v327_v53  }
  0x40   :  { %864 = vmatprep.subr.bf16.mxu1 %v863_v55 }
  0x41   :  { %866 = vmatpush3.bf16.msra.mxu1 %v863_v55 }
  0x42   :  { %842 = vmatpush3.bf16.msra.mxu0 %v839_v44  ;;  %410 = vperm.xlu0 %885, %v328_v57  }
  0x43   :  { %844 = vmatprep.subr.bf16.mxu0 %v843_v52  ;;  %415 = vperm.xlu1 %886, %v329_v59  }
  0x44   :  { %868 = vmatprep.subr.bf16.mxu1 %v867_v6 }
  0x45   :  { %870 = vmatpush3.bf16.msra.mxu1 %v867_v6 }
  0x46   :  { %846 = vmatpush3.bf16.msra.mxu0 %v843_v52  ;;  %420 = vperm.xlu0 %885, %v330_v2  }
  0x47   :  { %425 = vperm.xlu1 %886, %v331_v5   ;;  %872 = vmatprep.subr.bf16.mxu1 %v871_v9 }
  0x49   :  { %736 = vmatmul.mubr.f32.vlgmr.msra.gmra.mrb[0].mxu0 %v87_v62  ;;  %874 = vmatpush3.bf16.msra.mxu1 %v871_v9 }
  0x4a   :  { %738 = vmatprep.mubr.f32.mxu0 %v88_v0  ;;  %876 = vmatprep.subr.bf16.mxu1 %v875_v36 }
  0x4d   :  { %739 = vmatmul.mubr.f32.gmra.mrb[2].mxu0 %v89_v7  ;;  %878 = vmatpush3.bf16.msra.mxu1 %v875_v36 }
  0x4e   :  { %741 = vmatprep.mubr.f32.mxu0 %v90_v10 }
  0x51   :  { %742 = vmatmul.mubr.f32.gmra.mrb[4].mxu0 %v91_v13 }
  0x52   :  { %744 = vmatprep.mubr.f32.mxu0 %v92_v15 }
  0x55   :  { %745 = vmatmul.mubr.f32.gmra.mrb[6].mxu0 %v93_v17 }
  0x56   :  { %747 = vmatprep.mubr.f32.mxu0 %v94_v19 }
  0x59   :  { %748 = vmatmul.mubr.f32.gmra.mrb[8].mxu0 %v95_v22 }
  0x5a   :  { %750 = vmatprep.mubr.f32.mxu0 %v96_v24 }
  0x5d   :  { %751 = vmatmul.mubr.f32.gmra.mrb[10].mxu0 %v97_v26 }
  0x5e   :  { %753 = vmatprep.mubr.f32.mxu0 %v98_v28 }
  0x61   :  { %754 = vmatmul.mubr.f32.gmra.mrb[12].mxu0 %v99_v30 }
  0x62   :  { %756 = vmatprep.mubr.f32.mxu0 %v100_v32 }
  0x65   :  { %757 = vmatmul.mubr.f32.gmra.mrb[14].mxu0 %v101_v33 }
  0xa9   :  { %v351_v37 = vpop.permute.xlu0 %350 }
  0xaa   :  { %v361_v38 = vpop.permute.xlu1 %360 }
  0xad   :  { %v356_v39 = vpop.permute.xlu0 %355 }
  0xae   :  { %v366_v40 = vpop.permute.xlu1 %365 }
  0xb1   :  { %v371_v41 = vpop.permute.xlu0 %370 }
  0xb2   :  { %v376_v42 = vpop.permute.xlu1 %375 }
  0xb5   :  { %v381_v48 = vpop.permute.xlu0 %380 }
  0xb6   :  { %v386_v50 = vpop.permute.xlu1 %385 }
  0xb9   :  { %v391_v56 = vpop.permute.xlu0 %390 }
  0xba   :  { %v396_v58 = vpop.permute.xlu1 %395 }
  0xbd   :  { %v401_v0 = vpop.permute.xlu0 %400 }
  0xbe   :  { %v406_v2 = vpop.permute.xlu1 %405 }
  0xc1   :  { %v411_v8 = vpop.permute.xlu0 %410 }
  0xc2   :  { %v416_v10 = vpop.permute.xlu1 %415 }
  0xc5   :  { %v421_v16 = vpop.permute.xlu0 %420 }
  0xc6   :  { %v426_v18 = vpop.permute.xlu1 %425 }
 0x11c   :  { %v737_v43 = vpop.f32.mrb[0].mxu0 }
 0x11d   :  { %v202_v44 = vpop.f32.mrb[1].mxu0  ;;  %v429_v46 = vmul.f32 %v737_v43, %v356_v39 }
 0x11e   :  { %v428_v45 = vmul.f32 %v351_v37, %v202_v44 }
 0x120   :  { %v740_v47 = vpop.f32.mrb[2].mxu0  ;;  %791 = vmatprep.mubr.f32.mxu1 %v428_v45 }
 0x121   :  { %v212_v49 = vpop.f32.mrb[3].mxu0  ;;  %792 = vmatmul.mubr.f32.vlgmr.msra.gmra.mrb[0].mxu1 %v429_v46  ;;  %v431_v52 = vmul.f32 %v740_v47, %v366_v40 }
 0x122   :  { %v430_v51 = vmul.f32 %v361_v38, %v212_v49 }
 0x124   :  { %v743_v53 = vpop.f32.mrb[4].mxu0  ;;  %794 = vmatprep.mubr.f32.mxu1 %v430_v51 }
 0x125   :  { %v222_v54 = vpop.f32.mrb[5].mxu0  ;;  %795 = vmatmul.mubr.f32.gmra.mrb[2].mxu1 %v431_v52  ;;  %v433_v57 = vmul.f32 %v743_v53, %v376_v42 }
 0x126   :  { %v432_v55 = vmul.f32 %v371_v41, %v222_v54 }
 0x128   :  { %v746_v59 = vpop.f32.mrb[6].mxu0  ;;  %797 = vmatprep.mubr.f32.mxu1 %v432_v55 }
 0x129   :  { %v232_v60 = vpop.f32.mrb[7].mxu0  ;;  %798 = vmatmul.mubr.f32.gmra.mrb[4].mxu1 %v433_v57  ;;  %v435_v62 = vmul.f32 %v746_v59, %v386_v50 }
 0x12a   :  { %v434_v61 = vmul.f32 %v381_v48, %v232_v60 }
 0x12c   :  { %v749_v63 = vpop.f32.mrb[8].mxu0  ;;  %800 = vmatprep.mubr.f32.mxu1 %v434_v61 }
 0x12d   :  { %v242_v1 = vpop.f32.mrb[9].mxu0  ;;  %801 = vmatmul.mubr.f32.gmra.mrb[6].mxu1 %v435_v62  ;;  %v437_v4 = vmul.f32 %v749_v63, %v396_v58 }
 0x12e   :  { %v436_v3 = vmul.f32 %v391_v56, %v242_v1 }
 0x130   :  { %v752_v5 = vpop.f32.mrb[10].mxu0  ;;  %803 = vmatprep.mubr.f32.mxu1 %v436_v3 }
 0x131   :  { %v252_v6 = vpop.f32.mrb[11].mxu0  ;;  %804 = vmatmul.mubr.f32.gmra.mrb[8].mxu1 %v437_v4  ;;  %v439_v9 = vmul.f32 %v752_v5, %v406_v2 }
 0x132   :  { %v438_v7 = vmul.f32 %v401_v0, %v252_v6 }
 0x134   :  { %v755_v11 = vpop.f32.mrb[12].mxu0  ;;  %806 = vmatprep.mubr.f32.mxu1 %v438_v7 }
 0x135   :  { %v262_v12 = vpop.f32.mrb[13].mxu0  ;;  %807 = vmatmul.mubr.f32.gmra.mrb[10].mxu1 %v439_v9  ;;  %v441_v14 = vmul.f32 %v755_v11, %v416_v10 }
 0x136   :  { %v440_v13 = vmul.f32 %v411_v8, %v262_v12 }
 0x138   :  { %v758_v15 = vpop.f32.mrb[14].mxu0  ;;  %809 = vmatprep.mubr.f32.mxu1 %v440_v13 }
 0x139   :  { %v272_v17 = vpop.f32.mrb[15].mxu0  ;;  %810 = vmatmul.mubr.f32.gmra.mrb[12].mxu1 %v441_v14  ;;  %v443_v20 = vmul.f32 %v758_v15, %v426_v18 }
 0x13a   :  { %v442_v19 = vmul.f32 %v421_v16, %v272_v17 }
 0x13c   :  { %812 = vmatprep.mubr.f32.mxu1 %v442_v19 }
 0x13d   :  { %813 = vmatmul.mubr.f32.gmra.mrb[14].mxu1 %v443_v20 }
 0x1f4   :  { %v793_v21 = vpop.f32.mrb[0].mxu1 }
 0x1f5   :  { %606 = vst [vmem:[#allocation8 + $0x8] sm:$0xff] %v793_v21  ;;  %v526_v22 = vpop.f32.mrb[1].mxu1 }
 0x1f6   :  { %605 = vst [vmem:[#allocation8] sm:$0xff] %v526_v22 }
 0x1f8   :  { %v796_v23 = vpop.f32.mrb[2].mxu1 }
 0x1f9   :  { %608 = vst [vmem:[#allocation8 + $0x18] sm:$0xff] %v796_v23  ;;  %v536_v24 = vpop.f32.mrb[3].mxu1 }
 0x1fa   :  { %607 = vst [vmem:[#allocation8 + $0x10] sm:$0xff] %v536_v24 }
 0x1fc   :  { %v799_v25 = vpop.f32.mrb[4].mxu1 }
 0x1fd   :  { %610 = vst [vmem:[#allocation8 + $0x28] sm:$0xff] %v799_v25  ;;  %v546_v26 = vpop.f32.mrb[5].mxu1 }
 0x1fe   :  { %609 = vst [vmem:[#allocation8 + $0x20] sm:$0xff] %v546_v26 }
 0x200   :  { %v802_v27 = vpop.f32.mrb[6].mxu1 }
 0x201   :  { %612 = vst [vmem:[#allocation8 + $0x38] sm:$0xff] %v802_v27  ;;  %v556_v28 = vpop.f32.mrb[7].mxu1 }
 0x202   :  { %611 = vst [vmem:[#allocation8 + $0x30] sm:$0xff] %v556_v28 }
 0x204   :  { %v805_v29 = vpop.f32.mrb[8].mxu1 }
 0x205   :  { %614 = vst [vmem:[#allocation8 + $0x48] sm:$0xff] %v805_v29  ;;  %v566_v30 = vpop.f32.mrb[9].mxu1 }
 0x206   :  { %613 = vst [vmem:[#allocation8 + $0x40] sm:$0xff] %v566_v30 }
 0x208   :  { %v808_v31 = vpop.f32.mrb[10].mxu1 }
 0x209   :  { %616 = vst [vmem:[#allocation8 + $0x58] sm:$0xff] %v808_v31  ;;  %v576_v32 = vpop.f32.mrb[11].mxu1 }
 0x20a   :  { %615 = vst [vmem:[#allocation8 + $0x50] sm:$0xff] %v576_v32 }
 0x20c   :  { %v811_v33 = vpop.f32.mrb[12].mxu1 }
 0x20d   :  { %618 = vst [vmem:[#allocation8 + $0x68] sm:$0xff] %v811_v33  ;;  %v586_v34 = vpop.f32.mrb[13].mxu1 }
 0x20e   :  { %617 = vst [vmem:[#allocation8 + $0x60] sm:$0xff] %v586_v34 }
 0x210   :  { %v814_v35 = vpop.f32.mrb[14].mxu1 }
 0x211   :  { %620 = vst [vmem:[#allocation8 + $0x78] sm:$0xff] %v814_v35  ;;  %v596_v36 = vpop.f32.mrb[15].mxu1 }
 0x212   :  { %619 = vst [vmem:[#allocation8 + $0x70] sm:$0xff] %v596_v36 }
 0x213   :  { %942 = shalt.err (!%p939_p6)
}
 0x214   :  { %s943_s30 = scalar_lea.hbm %s1141_s4, 2048 }
 0x215   :  { %p944_p7 = scmp.ne.s32.totalorder %s1141_s4, %s943_s30  ;;  %p947_p8 = scmp.lt.u32.totalorder %s943_s30, %s1141_s4 }
 0x217   :  { %p949_p9 = pnand %p947_p8, %p944_p7 }
 0x219   :  { %952 = shalt.err (!%p949_p9)
}
 0x21a   :  { %632 = dma.vmem_to_hbm [thread:$0]  %s627_s24, 2048, %s1141_s4, [#allocation5], %s960_s25, %s960_s25, %s961_s26  }
 0x21b   :  { %957 = dma.done.wait [#allocation5], 2048  }
 0x21c   :  { %958 = vsyncadd [#allocation5], 4294965248 }
 0x21d   :  { %636 = vsyncpa [#allocation4], 1 }
 0x21e   :  { %637 = vsyncpa [#allocation7], 1 }
 0x21f   :  { %638 = vsyncpa [#allocation5], 1 }

</bundles_post_ra>
